<compile_context>
chip_gen: v7x
topology: tpu7x:2x2x1
jax: 0.10.0
libtpu: 0.0.40
codegen_flags: <defaults>
</compile_context>

<pallas_src>
import functools

import numpy as np
import jax
import jax.numpy as jnp
from jax.experimental import pallas as pl
from jax.experimental.pallas import tpu as pltpu


def _pick_tile(n, target, align=128, min_tiles=1):
    """Largest power-of-two-multiple-of-`align` tile <= target that still gives
    at least `min_tiles` tiles for an `n`-sized (padded to `align`) axis."""
    n_pad = -(-n // align) * align
    t = target
    while t > align and n_pad < min_tiles * t:
        t //= 2
    return min(t, n_pad)


# ---------------------------------------------------------------------------
# Pallas kernel: surfel (disc) rasterisation + colour accumulation + clamp
# ---------------------------------------------------------------------------
def _surfel_raster_kernel(rays_ref, pts_ref, colt_ref, out_ref, *, radius, sharp):
    ni = pl.program_id(1)

    @pl.when(ni == 0)
    def _():
        out_ref[...] = jnp.zeros_like(out_ref)

    rays4 = rays_ref[...]          # (4, TP)  [rx, ry, rz, |r|^2]
    rxyz = rays4[0:3, :]           # (3, TP)
    rr = rays4[3:4, :]             # (1, TP)

    pts = pts_ref[...]             # (TN, 8)  [cx,cy,cz, nx,ny,nz, n.c, |c|^2]
    c = pts[:, 0:3]                # (TN, 3)
    n = pts[:, 3:6]                # (TN, 3)
    nc = pts[:, 6:7]               # (TN, 1)
    cc = pts[:, 7:8]               # (TN, 1)

    # Outer products on the MXU (extended slot is otherwise idle).
    nr = jnp.dot(n, rxyz, preferred_element_type=jnp.float32)   # (TN, TP)
    cr = jnp.dot(c, rxyz, preferred_element_type=jnp.float32)   # (TN, TP)

    # Sign-preserving clamp (avoid flipping t for near-grazing rays).
    eps = 1e-8
    nr_safe = jnp.where(jnp.abs(nr) < eps, jnp.where(nr < 0.0, -eps, eps), nr)

    # Ray-plane intersection parameter t = (n.c)/(n.r); EUP approx reciprocal.
    t = nc * pl.reciprocal(nr_safe, approx=True)                # (TN, TP)

    # Squared distance hit-point -> surfel centre:
    # |t*r - c|^2 = t^2 |r|^2 - 2 t (c.r) + |c|^2
    d2 = t * (t * rr - 2.0 * cr) + cc
    d = jnp.sqrt(jnp.maximum(d2, 0.0))

    # sigmoid(x) == 0.5*(1 + tanh(0.5*x)) : one EUP push instead of exp+recip.
    prob = 0.5 * (1.0 + jnp.tanh((0.5 * sharp) * (radius - d)))
    prob = jnp.where(t > 0.0, prob, 0.0)        # in-front-of-camera mask
    # (point validity is folded into colt in the wrapper)

    # Colour accumulation: (3, TN) @ (TN, TP) -> (3, TP) on the MXU.
    out_ref[...] += jnp.dot(colt_ref[...], prob,
                            preferred_element_type=jnp.float32)

    @pl.when(ni == pl.num_programs(1) - 1)
    def _():
        # torch.clamp(..., max=1)  (no min clamp)
        out_ref[...] = jnp.minimum(out_ref[...], 1.0)


def surfel_rasterize(rays_xyz, centers, normals, colors, valid, *, radius, sharp):
    """rays_xyz: (3, P), centers/normals/colors: (N, 3), valid: (N,) -> (3, P)."""
    P = rays_xyz.shape[1]
    N = centers.shape[0]

    # Tile sizes: big lane-dense pixel tiles, but keep >= 2 pixel tiles when
    # possible so the parallel axis can shard across both v7x TensorCores.
    TP = _pick_tile(P, 512, min_tiles=2)
    TN = _pick_tile(N, 256, min_tiles=1)
    Ppad = pl.cdiv(P, TP) * TP
    Npad = pl.cdiv(N, TN) * TN

    # Rays packed as (4, P): [rx, ry, rz, |r|^2]; padded columns are [0,0,1,1]
    # so padded pixels stay finite (their output columns are sliced off).
    rr = jnp.sum(rays_xyz * rays_xyz, axis=0, keepdims=True)        # (1, P)
    rays4 = jnp.concatenate([rays_xyz, rr], axis=0)                 # (4, P)
    rays_p = jnp.pad(rays4, ((0, 0), (0, Ppad - P)))
    if Ppad > P:
        rays_p = rays_p.at[2:, P:].set(1.0)

    # Points packed as (N, 8): [cx,cy,cz, nx,ny,nz, n.c, |c|^2] (zero-padded
    # rows give t == 0 -> masked out, and their colours are zero anyway).
    nc = jnp.sum(normals * centers, axis=1, keepdims=True)          # (N, 1)
    cc = jnp.sum(centers * centers, axis=1, keepdims=True)          # (N, 1)
    pts = jnp.concatenate([centers, normals, nc, cc], axis=1)       # (N, 8)
    pts_p = jnp.pad(pts, ((0, Npad - N), (0, 0)))

    # Fold the validity mask into the colour matrix (transposed for the matmul).
    colt = (colors * valid[:, None]).T.astype(jnp.float32)          # (3, N)
    colt_p = jnp.pad(colt, ((0, 0), (0, Npad - N)))

    kernel = functools.partial(_surfel_raster_kernel,
                               radius=float(radius), sharp=float(sharp))
    out = pl.pallas_call(
        kernel,
        out_shape=jax.ShapeDtypeStruct((3, Ppad), jnp.float32),
        grid_spec=pltpu.PrefetchScalarGridSpec(
            num_scalar_prefetch=0,
            grid=(Ppad // TP, Npad // TN),
            in_specs=[
                pl.BlockSpec((4, TP), lambda pi, ni: (0, pi)),   # rays + |r|^2
                pl.BlockSpec((TN, 8), lambda pi, ni: (ni, 0)),   # packed points
                pl.BlockSpec((3, TN), lambda pi, ni: (0, ni)),   # colours^T * valid
            ],
            out_specs=pl.BlockSpec((3, TP), lambda pi, ni: (0, pi)),
        ),
        compiler_params=pltpu.CompilerParams(
            dimension_semantics=("parallel", "arbitrary")),
    )(rays_p, pts_p, colt_p)
    return out[:, :P]


# ---------------------------------------------------------------------------
# Plain-JAX glue (projection, pose, packaging) — mirrors Rasterer.forward
# ---------------------------------------------------------------------------
def quat_to_rotmat(q):
    q = q / jnp.linalg.norm(q)
    w, x, y, z = q[0], q[1], q[2], q[3]
    return jnp.stack([
        jnp.stack([1 - 2 * (y * y + z * z), 2 * (x * y - w * z), 2 * (x * z + w * y)]),
        jnp.stack([2 * (x * y + w * z), 1 - 2 * (x * x + z * z), 2 * (y * z - w * x)]),
        jnp.stack([2 * (x * z - w * y), 2 * (y * z + w * x), 1 - 2 * (x * x + y * y)]),
    ])


class RastererPallas:
    def __init__(self, K, resolution_px):
        self.res_x_px, self.res_y_px = resolution_px
        # Same pixel grid buffer as the PyTorch module (x first, then y).
        yy, xx = np.mgrid[0:self.res_y_px, 0:self.res_x_px]
        grid = np.concatenate((xx[..., None], yy[..., None]), axis=-1)
        grid = jnp.asarray(grid.reshape(-1, 2), jnp.float32)          # (P, 2)
        self.K = jnp.asarray(K, jnp.float32)
        self.Kinv = jnp.linalg.inv(self.K)
        # Camera rays K^{-1}[u, v, 1] depend only on K and the resolution:
        # precompute once instead of per forward call.
        ones = jnp.ones((grid.shape[0], 1), jnp.float32)
        self.rays = (jnp.concatenate([grid, ones], axis=-1) @ self.Kinv.T).T  # (3, P)

    def __call__(self, coords, normals, colors, camera_matrix,
                 diam=0.04, sharp=400.0):
        # --- project_in_2D_quat equivalent -------------------------------
        # camera_matrix = [qw, qx, qy, qz, tx, ty, tz]
        q = camera_matrix[:4]
        trans = camera_matrix[4:7]
        R = quat_to_rotmat(q)
        p3d = coords @ R.T + trans                # points_3d   (N, 3)
        n3d = normals @ R.T                       # normals_3d  (N, 3)
        proj = p3d @ self.K.T
        p2d = proj[:, :2] / proj[:, 2:3]          # points_2d   (N, 2)
        in_front = p3d[:, 2] > 0.0
        valid = in_front.astype(jnp.float32)

        # --- inside_surfel + colour accumulation (Pallas kernel) ---------
        color_flat = surfel_rasterize(self.rays, p3d, n3d, colors, valid,
                                      radius=diam / 2.0, sharp=sharp)

        rendering = {
            'color': color_flat.reshape(3, self.res_y_px, self.res_x_px)
        }

        # --- output_points=True branch ------------------------------------
        inside = (in_front
                  & (p2d[:, 0] >= 0) & (p2d[:, 0] < self.res_x_px)
                  & (p2d[:, 1] >= 0) & (p2d[:, 1] < self.res_y_px))
        # TODO(synk): torch compacts filtered points to a variable-length tensor;
        # static TPU shapes -> return masked (zeroed) arrays of the same shape.
        points = {
            'xyz': p3d,
            'rgb': (colors + 1.0) / 2.0,
            'xyzf': jnp.where(inside[:, None], p3d, 0.0),
            'rgbf': jnp.where(inside[:, None], (colors + 1.0) / 2.0, 0.0),
        }
        return rendering, points


# ---------------------------------------------------------------------------
if __name__ == "__main__":
    key = jax.random.PRNGKey(0)
    res = (16, 16)          # (res_x, res_y)
    num_points = 64

    # Deterministic intrinsics (stand-in for calibration_matrix()).
    fx = fy = 20.0
    K = np.array([[fx, 0.0, res[0] / 2.0],
                  [0.0, fy, res[1] / 2.0],
                  [0.0, 0.0, 1.0]], dtype=np.float32)

    rasterer = RastererPallas(K, res)

    k1, k2, k3 = jax.random.split(key, 3)
    coords = jax.random.uniform(k1, (num_points, 3), jnp.float32, -0.3, 0.3)
    normals = jax.random.normal(k2, (num_points, 3), jnp.float32)
    normals = normals / jnp.linalg.norm(normals, axis=1, keepdims=True)
    colors = jax.random.uniform(k3, (num_points, 3), jnp.float32, 0.0, 1.0)
    # Identity rotation quaternion, camera 1.5 units behind the point cloud.
    camera_matrix = jnp.array([1.0, 0.0, 0.0, 0.0, 0.0, 0.0, 1.5], jnp.float32)

    rendering, points = rasterer(coords, normals, colors, camera_matrix)
    jax.block_until_ready(rendering['color'])

    assert rendering['color'].shape == (3, res[1], res[0])
    assert rendering['color'].dtype == jnp.float32
    assert points['xyz'].shape == (num_points, 3)
    assert bool(jnp.all(jnp.isfinite(rendering['color'])))
    assert bool(jnp.all(rendering['color'] <= 1.0 + 1e-6))
    print("KERNEL_OK")
</pallas_src>

<mosaic_0001>
module attributes {stable_mosaic.version = 11 : i64} {
  func.func @_surfel_raster_kernel(%arg0: i32, %arg1: i32, %arg2: memref<4x128xf32, #tpu.memory_space<vmem>>, %arg3: memref<128x8xf32, #tpu.memory_space<vmem>>, %arg4: memref<3x128xf32, #tpu.memory_space<vmem>>, %arg5: memref<3x128xf32, #tpu.memory_space<vmem>>) attributes {dimension_semantics = [#tpu.dimension_semantics<parallel>, #tpu.dimension_semantics<arbitrary>], iteration_bounds = array<i64: 2, 1>, scalar_prefetch = 0 : i64, scratch_operands = 0 : i64, tpu.core_type = #tpu.core_type<tc>, window_params = [{transform_indices = @transform_0, window_bounds = array<i64: 4, 128>}, {transform_indices = @transform_1, window_bounds = array<i64: 128, 8>}, {transform_indices = @transform_2, window_bounds = array<i64: 3, 128>}, {transform_indices = @transform_3, window_bounds = array<i64: 3, 128>}]} {
    %c0_i32 = arith.constant 0 : i32
    %0 = arith.cmpi eq, %arg1, %c0_i32 : i32
    %1 = arith.extui %0 : i1 to i32
    %c0_i32_0 = arith.constant 0 : i32
    %2 = arith.cmpi ne, %1, %c0_i32_0 : i32
    scf.if %2 {
      %cst_26 = arith.constant 0.000000e+00 : f32
      %57 = vector.broadcast %cst_26 : f32 to vector<3x128xf32>
      %c0_27 = arith.constant 0 : index
      %c0_28 = arith.constant 0 : index
      %58 = vector.load %arg5[%c0_27, %c0_28] : memref<3x128xf32, #tpu.memory_space<vmem>>, vector<3x128xf32>
      tpu.vector_store %arg5[%c0_27, %c0_28], %57 {strides = array<i32>} : memref<3x128xf32, #tpu.memory_space<vmem>>, vector<3x128xf32>,
    } else {
    }
    %c0 = arith.constant 0 : index
    %c0_1 = arith.constant 0 : index
    %3 = vector.load %arg2[%c0, %c0_1] : memref<4x128xf32, #tpu.memory_space<vmem>>, vector<4x128xf32>
    %4 = vector.extract_strided_slice %3 {offsets = [0, 0], sizes = [3, 128], strides = [1, 1]} : vector<4x128xf32> to vector<3x128xf32>
    %5 = vector.extract_strided_slice %3 {offsets = [3, 0], sizes = [1, 128], strides = [1, 1]} : vector<4x128xf32> to vector<1x128xf32>
    %c0_2 = arith.constant 0 : index
    %c0_3 = arith.constant 0 : index
    %6 = vector.load %arg3[%c0_2, %c0_3] : memref<128x8xf32, #tpu.memory_space<vmem>>, vector<128x8xf32>
    %7 = vector.extract_strided_slice %6 {offsets = [0, 0], sizes = [128, 3], strides = [1, 1]} : vector<128x8xf32> to vector<128x3xf32>
    %8 = vector.extract_strided_slice %6 {offsets = [0, 3], sizes = [128, 3], strides = [1, 1]} : vector<128x8xf32> to vector<128x3xf32>
    %9 = vector.extract_strided_slice %6 {offsets = [0, 6], sizes = [128, 1], strides = [1, 1]} : vector<128x8xf32> to vector<128x1xf32>
    %10 = vector.extract_strided_slice %6 {offsets = [0, 7], sizes = [128, 1], strides = [1, 1]} : vector<128x8xf32> to vector<128x1xf32>
    %cst = arith.constant dense<0.000000e+00> : vector<128x128xf32>
    %11 = tpu.matmul %8, %4, %cst {dimension_numbers = #tpu.dot_dimension_numbers<[1], [0], [0], [1], [0, 0, 1, 1], [], []>} : vector<128x3xf32>, vector<3x128xf32>, vector<128x128xf32> -> vector<128x128xf32>
    %cst_4 = arith.constant dense<0.000000e+00> : vector<128x128xf32>
    %12 = tpu.matmul %7, %4, %cst_4 {dimension_numbers = #tpu.dot_dimension_numbers<[1], [0], [0], [1], [0, 0, 1, 1], [], []>} : vector<128x3xf32>, vector<3x128xf32>, vector<128x128xf32> -> vector<128x128xf32>
    %13 = math.absf %11 : vector<128x128xf32>
    %cst_5 = arith.constant 9.99999993E-9 : f32
    %14 = vector.broadcast %cst_5 : f32 to vector<128x128xf32>
    %15 = arith.cmpf olt, %13, %14 : vector<128x128xf32>
    %cst_6 = arith.constant 0.000000e+00 : f32
    %16 = vector.broadcast %cst_6 : f32 to vector<128x128xf32>
    %17 = arith.cmpf olt, %11, %16 : vector<128x128xf32>
    %cst_7 = arith.constant -9.99999993E-9 : f32
    %cst_8 = arith.constant 9.99999993E-9 : f32
    %18 = vector.broadcast %cst_7 : f32 to vector<128x128xf32>
    %19 = vector.broadcast %cst_8 : f32 to vector<128x128xf32>
    %20 = arith.select %17, %18, %19 : vector<128x128xi1>, vector<128x128xf32>
    %21 = arith.select %15, %20, %11 : vector<128x128xi1>, vector<128x128xf32>
    %22 = tpu.reciprocal %21 {approx = true} : vector<128x128xf32> -> vector<128x128xf32>
    %23 = vector.broadcast %9 : vector<128x1xf32> to vector<128x128xf32>
    %24 = arith.mulf %23, %22 : vector<128x128xf32>
    %25 = vector.broadcast %5 : vector<1x128xf32> to vector<128x128xf32>
    %26 = arith.mulf %24, %25 : vector<128x128xf32>
    %cst_9 = arith.constant 2.000000e+00 : f32
    %27 = vector.broadcast %cst_9 : f32 to vector<128x128xf32>
    %28 = arith.mulf %27, %12 : vector<128x128xf32>
    %29 = arith.subf %26, %28 : vector<128x128xf32>
    %30 = arith.mulf %24, %29 : vector<128x128xf32>
    %31 = vector.broadcast %10 : vector<128x1xf32> to vector<128x128xf32>
    %32 = arith.addf %30, %31 : vector<128x128xf32>
    %cst_10 = arith.constant 0.000000e+00 : f32
    %33 = vector.broadcast %cst_10 : f32 to vector<128x128xf32>
    %34 = arith.maximumf %32, %33 : vector<128x128xf32>
    %35 = math.sqrt %34 : vector<128x128xf32>
    %cst_11 = arith.constant 2.000000e-02 : f32
    %36 = vector.broadcast %cst_11 : f32 to vector<128x128xf32>
    %37 = arith.subf %36, %35 : vector<128x128xf32>
    %cst_12 = arith.constant 2.000000e+02 : f32
    %38 = vector.broadcast %cst_12 : f32 to vector<128x128xf32>
    %39 = arith.mulf %38, %37 : vector<128x128xf32>
    %40 = math.tanh %39 : vector<128x128xf32>
    %cst_13 = arith.constant 1.000000e+00 : f32
    %41 = vector.broadcast %cst_13 : f32 to vector<128x128xf32>
    %42 = arith.addf %41, %40 : vector<128x128xf32>
    %cst_14 = arith.constant 5.000000e-01 : f32
    %43 = vector.broadcast %cst_14 : f32 to vector<128x128xf32>
    %44 = arith.mulf %43, %42 : vector<128x128xf32>
    %cst_15 = arith.constant 0.000000e+00 : f32
    %45 = vector.broadcast %cst_15 : f32 to vector<128x128xf32>
    %46 = arith.cmpf ogt, %24, %45 : vector<128x128xf32>
    %cst_16 = arith.constant 0.000000e+00 : f32
    %47 = vector.broadcast %cst_16 : f32 to vector<128x128xf32>
    %48 = arith.select %46, %44, %47 : vector<128x128xi1>, vector<128x128xf32>
    %c0_17 = arith.constant 0 : index
    %c0_18 = arith.constant 0 : index
    %49 = vector.load %arg5[%c0_17, %c0_18] : memref<3x128xf32, #tpu.memory_space<vmem>>, vector<3x128xf32>
    %c0_19 = arith.constant 0 : index
    %c0_20 = arith.constant 0 : index
    %50 = vector.load %arg4[%c0_19, %c0_20] : memref<3x128xf32, #tpu.memory_space<vmem>>, vector<3x128xf32>
    %cst_21 = arith.constant dense<0.000000e+00> : vector<3x128xf32>
    %51 = tpu.matmul %50, %48, %cst_21 {dimension_numbers = #tpu.dot_dimension_numbers<[1], [0], [0], [1], [0, 0, 1, 1], [], []>} : vector<3x128xf32>, vector<128x128xf32>, vector<3x128xf32> -> vector<3x128xf32>
    %52 = arith.addf %49, %51 : vector<3x128xf32>
    %c0_22 = arith.constant 0 : index
    %c0_23 = arith.constant 0 : index
    %53 = vector.load %arg5[%c0_22, %c0_23] : memref<3x128xf32, #tpu.memory_space<vmem>>, vector<3x128xf32>
    tpu.vector_store %arg5[%c0_22, %c0_23], %52 {strides = array<i32>} : memref<3x128xf32, #tpu.memory_space<vmem>>, vector<3x128xf32>,
    %c0_i32_24 = arith.constant 0 : i32
    %54 = arith.cmpi eq, %arg1, %c0_i32_24 : i32
    %55 = arith.extui %54 : i1 to i32
    %c0_i32_25 = arith.constant 0 : i32
    %56 = arith.cmpi ne, %55, %c0_i32_25 : i32
    scf.if %56 {
      %c0_26 = arith.constant 0 : index
      %c0_27 = arith.constant 0 : index
      %57 = vector.load %arg5[%c0_26, %c0_27] : memref<3x128xf32, #tpu.memory_space<vmem>>, vector<3x128xf32>
      %cst_28 = arith.constant 1.000000e+00 : f32
      %58 = vector.broadcast %cst_28 : f32 to vector<3x128xf32>
      %59 = arith.minimumf %57, %58 : vector<3x128xf32>
      %c0_29 = arith.constant 0 : index
      %c0_30 = arith.constant 0 : index
      %60 = vector.load %arg5[%c0_29, %c0_30] : memref<3x128xf32, #tpu.memory_space<vmem>>, vector<3x128xf32>
      tpu.vector_store %arg5[%c0_29, %c0_30], %59 {strides = array<i32>} : memref<3x128xf32, #tpu.memory_space<vmem>>, vector<3x128xf32>,
    } else {
    }
    return
  }
  func.func @transform_0(%arg0: i32, %arg1: i32) -> (i32, i32) {
    %c0_i32 = arith.constant 0 : i32
    %c0_i32_0 = arith.constant 0 : i32
    return %c0_i32, %arg0 : i32, i32
  }
  func.func @transform_1(%arg0: i32, %arg1: i32) -> (i32, i32) {
    %c0_i32 = arith.constant 0 : i32
    %c0_i32_0 = arith.constant 0 : i32
    return %arg1, %c0_i32 : i32, i32
  }
  func.func @transform_2(%arg0: i32, %arg1: i32) -> (i32, i32) {
    %c0_i32 = arith.constant 0 : i32
    %c0_i32_0 = arith.constant 0 : i32
    return %c0_i32, %arg1 : i32, i32
  }
  func.func @transform_3(%arg0: i32, %arg1: i32) -> (i32, i32) {
    %c0_i32 = arith.constant 0 : i32
    %c0_i32_0 = arith.constant 0 : i32
    return %c0_i32, %arg0 : i32, i32
  }
}

</mosaic_0001>

<bundles_post_ra>
// kernel: tpu_custom_call.1
= control target key start
LH: loop header
LB: loop body
LE: loop exit
PB: predicated region body
PF: predicated region fallthrough
CT: control target
= control target key end

     0   :  { %8 = vsyncpa [#allocation3], 0  ;;  %s2724_s0 = inlined_call_operand.vmem [shape: f32[4,256], index: 0, kind: input, shape index: {}]   ;;  %s2725_s1 = inlined_call_operand.vmem [shape: f32[128,8], index: 1, kind: input, shape index: {}]   ;;  %s2726_s2 = inlined_call_operand.vmem [shape: f32[3,128], index: 2, kind: input, shape index: {}]   ;;  %s2727_s3 = inlined_call_operand.hbm [shape: f32[3,256], index: 3, kind: output, shape index: {}]  }
   0x1   :  { %10 = vsyncpa [#allocation3 + $0x1], 0  ;;  %s1914_s12 = smov 0   ;;  %s1916_s13 = smov 0  }
   0x2   :  { %s1918_s14 = smov 0   ;;  %s1920_s15 = smov 0  }
   0x3   :  { %s1922_s16 = smov 0   ;;  %s1924_s17 = smov 0  }
   0x4 LB: > { %s1401_s18 = sadd.s32 4294967295, %s1884_s17   ;;  %s1402_s19 = sadd.s32 4294967294, %s1884_s17   ;;  %s1884_s17 = sphi %s1924_s17, %s16_s17   ;;  %s1880_s16 = sphi %s1922_s16, %s2760_s16   ;;  %s1876_s15 = sphi %s1920_s15, %s2759_s15   ;;  %s1872_s14 = sphi %s1918_s14, %s2758_s14   ;;  %s1868_s13 = sphi %s1916_s13, %s2757_s13   ;;  %s1864_s12 = sphi %s1914_s12, %s2756_s12  }
   0x5   : > { %s28_s20 = sadd.s32 1, %s1880_s16  ;;  %s113_s21 = sadd.s32 1, %s1872_s14 }
   0x6   : > { %p30_p0 = scmp.ge.s32.totalorder %s28_s20, 2  ;;  %p123_p1 = scmp.ne.s32.totalorder %s1872_s14, %s1868_s13 }
   0x7   : > { %p124_p2 = scmp.eq.s32.totalorder %s1401_s18, 1  ;;  %p129_p3 = scmp.ne.s32.totalorder %s1868_s13, %s1864_s12 }
   0x8   : > { %s2762_s20 = smov (%p30_p0, %s28_s20), 0  ;;  %p130_p5 = scmp.eq.s32.totalorder %s1402_s19, 1 }
   0x9   : > { %p1954_p4 = por %p124_p2, %p123_p1  ;;  %s110_s23 = ssub.s32 %s1880_s16, %s2762_s20 }
   0xa   : > { %p1407_p6 = scmp.ge.s32.totalorder %s1884_s17, 1  ;;  %p111_p7 = scmp.eq.s32.totalorder %s110_s23, 0 }
   0xb   : > { %p1961_p8 = por %p130_p5, %p129_p3  ;;  %p171_p9 = scmp.lt.s32.totalorder %s1884_s17, 3 }
   0xc   : > { %s1967_s25 = scalar_select %p111_p7, %s1872_s14, %s113_s21  }
   0xd   : > { %p172_p10 = pnand %p1407_p6, %p171_p9 }
   0xe   : > { %v1972_v0 = vld [vmem:[%s2725_s1] sm:$0xff] (!%p172_p10)  ;;  %v1977_v1 = vld [vmem:[%s2725_s1 + $0x10] sm:$0xff] (!%p172_p10)  ;;  %p203_p11 = scmp.lt.s32.totalorder (!%p172_p10), %s1876_s15, 1  ;;  %s1886_s30 = smov (!%p172_p10), 125   ;;  %vm287_vm0 = vcmask (!%p172_p10), 23552   ;;  %v1987_v2 = vld [vmem:[%s2725_s1 + $0x8] sm:$0xff] (!%p172_p10)  ;;  %v822_v60 = vlaneseq (!%p172_p10) }
   0xf   : > { %175 = sbr.rel (%p172_p10) target bundleno = 710 (0x2c6), region = 32  ;;  %255 = vrot.lane.b32.xlu0 (!%p172_p10), %v1972_v0, %s1886_s30  ;;  %259 = vrot.lane.b32.xlu1 (!%p172_p10), %v1977_v1, %s1886_s30  ;;  %v1992_v3 = vld [vmem:[%s2725_s1 + $0x18] sm:$0xff] (!%p172_p10)  ;;  %vm320_vm1 = vcmask (!%p172_p10), 1042432   ;;  %v2007_v4 = vld [vmem:[%s2725_s1 + $0x20] sm:$0xff] (!%p172_p10)  ;;  %v1887_v15 = vmov (!%p172_p10), 6   ;;  %v1888_v18 = vmov (!%p172_p10), 7  }
  0x10   : > { %1543 = vmatprep.mubr.msk.f32.mxu1 (!%p172_p10), %vm287_vm0, %v1972_v0  ;;  %v2012_v5 = vld [vmem:[%s2725_s1 + $0x28] sm:$0xff] (!%p172_p10)  ;;  %v229_v7 = vld [vmem:[%s2725_s1 + $0x30] sm:$0xff] (!%p172_p10)  ;;  %v2030_v8 = vld [vmem:[%s2725_s1 + $0x38] sm:$0xff] (!%p172_p10)  ;;  %1697 = vset.pattern.permute.xlu1 (!%p172_p10), %v1887_v15  ;;  %v1889_v51 = vmov (!%p172_p10), 0.0|0.0   ;;  %v823_v63 = vshrl.u32 (!%p172_p10), %v822_v60, 7  ;;  %vm1890_vm2 = vmmov (!%p172_p10), 0  }
  0x11   : > { %v2042_v9 = vld [vmem:[%s2725_s1 + $0x40] sm:$0xff] (!%p172_p10)  ;;  %v232_v10 = vld [vmem:[%s2725_s1 + $0x48] sm:$0xff] (!%p172_p10)  ;;  %v233_v11 = vld [vmem:[%s2725_s1 + $0x50] sm:$0xff] (!%p172_p10)  ;;  %1696 = vset.pattern.permute.xlu0 (!%p172_p10), %v1887_v15 }
  0x12   : > { %v2060_v12 = vld [vmem:[%s2725_s1 + $0x58] sm:$0xff] (!%p172_p10)  ;;  %v235_v13 = vld [vmem:[%s2725_s1 + $0x60] sm:$0xff] (!%p172_p10)  ;;  %v236_v14 = vld [vmem:[%s2725_s1 + $0x68] sm:$0xff] (!%p172_p10) }
  0x13   : > { %257 = vrot.lane.b32.xlu0 (!%p172_p10), %v1987_v2, %s1886_s30  ;;  %261 = vrot.lane.b32.xlu1 (!%p172_p10), %v1992_v3, %s1886_s30  ;;  %v237_v16 = vld [vmem:[%s2725_s1 + $0x70] sm:$0xff] (!%p172_p10)  ;;  %v238_v17 = vld [vmem:[%s2725_s1 + $0x78] sm:$0xff] (!%p172_p10) }
  0x16   : > { %s204_s8 = scalar_select %p203_p11, %s1876_s15, 1 }
  0x17   : > { %263 = vrot.lane.b32.xlu0 %v2007_v4, %s1886_s30  ;;  %265 = vrot.lane.b32.xlu1 %v2012_v5, %s1886_s30 }
  0x18   : > { %s1409_s9 = sshll.u32 %s204_s8, 2 }
  0x19   : > { %s206_s18 = scalar_lea.vmem %s2724_s0, %s1409_s9  ;;  %s1461_s9 = sshll.u32 %s1876_s15, 6 }
  0x1a   : > { %v2014_v6 = vld [vmem:[%s206_s18] sm:$0xf]  ;;  %s2674_s19 = scalar_lea.hbm %s2727_s3, %s1461_s9  ;;  %s1893_s15 = smov [#allocation2]  }
  0x1b   : > { %1515 = vmatprep.subr.msk.mxu0 %vm320_vm1, %v2014_v6  ;;  %1541 = vmatprep.subr.msk.mxu1 %vm320_vm1, %v2014_v6  ;;  %s1810_s26 = sshll.u32 %s1893_s15, 4  ;;  %s1811_s26 = int_to_ptr.vmem [resolvable:$false] %s1810_s26 }
  0x1c   : > { %1516 = vmatpush3.msk.msra.mxu0 %vm320_vm1, %v2014_v6  ;;  %1542 = vmatpush3.msk.msra.mxu1 %vm320_vm1, %v2014_v6  ;;  %s1812_s27 = scalar_lea.vmem %s1811_s26, 128 }
  0x1d   : > { %1544 = vmatmul.mubr.msk.f32.vlgmr.msra.gmra.mrb[0].mxu1 %vm287_vm0, %v1987_v2  ;;  %267 = vrot.lane.b32.xlu0 %v229_v7, %s1886_s30 }
  0x1e   : > { %1546 = vmatprep.mubr.msk.f32.mxu1 %vm287_vm0, %v1977_v1  ;;  %269 = vrot.lane.b32.xlu1 %v2030_v8, %s1886_s30 }
  0x1f   : > { %1602 = vmatprep.subr.bf16.mxu0 %v1889_v51 }
  0x21   : > { %1547 = vmatmul.mubr.msk.f32.gmra.mrb[2].mxu1 %vm287_vm0, %v1992_v3  ;;  %271 = vrot.lane.b32.xlu0 %v2042_v9, %s1886_s30 }
  0x22   : > { %1549 = vmatprep.mubr.msk.f32.mxu1 %vm287_vm0, %v2007_v4  ;;  %273 = vrot.lane.b32.xlu1 %v232_v10, %s1886_s30 }
  0x25   : > { %1550 = vmatmul.mubr.msk.f32.gmra.mrb[4].mxu1 %vm287_vm0, %v2012_v5  ;;  %275 = vrot.lane.b32.xlu0 %v233_v11, %s1886_s30 }
  0x26   : > { %1552 = vmatprep.mubr.msk.f32.mxu1 %vm287_vm0, %v229_v7  ;;  %277 = vrot.lane.b32.xlu1 %v2060_v12, %s1886_s30 }
  0x29   : > { %1553 = vmatmul.mubr.msk.f32.gmra.mrb[6].mxu1 %vm287_vm0, %v2030_v8  ;;  %279 = vrot.lane.b32.xlu0 %v235_v13, %s1886_s30 }
  0x2a   : > { %1555 = vmatprep.mubr.msk.f32.mxu1 %vm287_vm0, %v2042_v9  ;;  %281 = vrot.lane.b32.xlu1 %v236_v14, %s1886_s30 }
  0x2d   : > { %1556 = vmatmul.mubr.msk.f32.gmra.mrb[8].mxu1 %vm287_vm0, %v232_v10  ;;  %283 = vrot.lane.b32.xlu0 %v237_v16, %s1886_s30 }
  0x2e   : > { %1558 = vmatprep.mubr.msk.f32.mxu1 %vm287_vm0, %v233_v11  ;;  %285 = vrot.lane.b32.xlu1 %v238_v17, %s1886_s30  ;;  %s200_s30 = sand.u32 1, %s1868_s13  }
  0x2f   : > { %s1408_s5 = sshll.u32 %s200_s30, 2  ;;  %s1291_s21 = scalar_lea.sflag [#allocation3], %s200_s30 }
  0x30   : > { %s2182_s6 = scalar_lea.vmem [#allocation2], %s1408_s5 }
  0x31   : > { %1559 = vmatmul.mubr.msk.f32.gmra.mrb[10].mxu1 %vm287_vm0, %v2060_v12  ;;  %743 = vperm.xlu0 %1696, %v1972_v0   ;;  %s1304_s10 = sshll.u32 %s2182_s6, 4  ;;  %s2676_s10 = int_to_ptr.vmem [resolvable:$true] %s1304_s10 }
  0x32   : > { %1561 = vmatprep.mubr.msk.f32.mxu1 %vm287_vm0, %v235_v13  ;;  %747 = vperm.xlu1 %1697, %v1987_v2   ;;  %s1806_s23 = scalar_lea.vmem %s2676_s10, 64  ;;  %p1813_p1 = scmp.lt.s32.totalorder %s2676_s10, %s1811_s26 }
  0x33   : > { %p1807_p12 = scmp.ne.s32.totalorder %s2676_s10, %s1806_s23  ;;  %p1814_p2 = scmp.lt.s32.totalorder %s1812_s27, %s1806_s23 }
  0x35   : > { %1562 = vmatmul.mubr.msk.f32.gmra.mrb[12].mxu1 %vm287_vm0, %v236_v14  ;;  %755 = vperm.xlu0 %1696, %v1992_v3   ;;  %p1808_p13 = pnand %p1807_p12, %p1954_p4  ;;  %p1815_p3 = por %p1814_p2, %p1813_p1 }
  0x36   : > { %1564 = vmatprep.mubr.msk.f32.mxu1 %vm287_vm0, %v237_v16  ;;  %751 = vperm.xlu1 %1697, %v1977_v1  }
  0x37   : > { %p1809_p0 = pneg %p1808_p13 }
  0x39   : > { %1565 = vmatmul.mubr.msk.f32.gmra.mrb[14].mxu1 %vm287_vm0, %v238_v17  ;;  %763 = vperm.xlu0 %1696, %v2012_v5   ;;  %p1816_p5 = pnand %p1815_p3, %p1809_p0 }
  0x3a   : > { %759 = vperm.xlu1 %1697, %v2007_v4  }
  0x3d   : > { %775 = vperm.xlu0 %1696, %v2042_v9  }
  0x3e   : > { %1698 = vset.pattern.permute.xlu1 %v1888_v18 }
  0x3f   : > { %891 = vperm.xlu1 %1698, %v1972_v0  }
  0x41   : > { %791 = vperm.xlu0 %1696, %v235_v13  }
  0x43   : > { %1699 = vset.pattern.permute.xlu1 %v1887_v15 }
  0x44   : > { %767 = vperm.xlu1 %1699, %v229_v7  }
  0x45   : > { %1705 = vset.pattern.permute.xlu0 %v1888_v18 }
  0x46   : > { %895 = vperm.xlu0 %1705, %v1987_v2   ;;  %v824_v2 = vsub.s32 3, %v823_v63 }
  0x48   : > { %771 = vperm.xlu1 %1699, %v2030_v8  }
  0x4a   : > { %899 = vperm.xlu0 %1705, %v1977_v1   ;;  %v1891_v1 = vmov 0.0  }
  0x4b   : > { %221 = vst [vmem:[%s2182_s6] sm:$0x7] %v1891_v1 }
  0x4c   : > { %1700 = vset.pattern.permute.xlu1 %v1888_v18 }
  0x4d   : > { %903 = vperm.xlu1 %1700, %v1992_v3  }
  0x4e   : > { %911 = vperm.xlu0 %1705, %v2012_v5  }
  0x51   : > { %1701 = vset.pattern.permute.xlu1 %v1887_v15 }
  0x52   : > { %779 = vperm.xlu1 %1701, %v232_v10   ;;  %915 = vperm.xlu0 %1705, %v229_v7  }
  0x56   : > { %1702 = vset.pattern.permute.xlu1 %v1888_v18  ;;  %927 = vperm.xlu0 %1705, %v232_v10  }
  0x57   : > { %907 = vperm.xlu1 %1702, %v2007_v4  }
  0x5a   : > { %931 = vperm.xlu0 %1705, %v233_v11  }
  0x5b   : > { %1703 = vset.pattern.permute.xlu1 %v1887_v15 }
  0x5c   : > { %783 = vperm.xlu1 %1703, %v233_v11   ;;  %v2189_v11 = vrot.slane %v2014_v6, %v824_v2 }
  0x5e   : > { %939 = vperm.xlu0 %1705, %v235_v13  }
  0x60   : > { %787 = vperm.xlu1 %1703, %v2060_v12  }
  0x62   : > { %947 = vperm.xlu0 %1705, %v237_v16  }
  0x64   : > { %1704 = vset.pattern.permute.xlu1 %v1888_v18 }
  0x65   : > { %919 = vperm.xlu1 %1704, %v2030_v8   ;;  %v1892_v8 = vmov 1e-08  }
  0x69   : > { %1706 = vset.pattern.permute.xlu1 %v1887_v15 }
  0x6a   : > { %795 = vperm.xlu1 %1706, %v236_v14  }
  0x6e   : > { %1707 = vset.pattern.permute.xlu1 %v1888_v18 }
  0x6f   : > { %923 = vperm.xlu1 %1707, %v2042_v9  }
  0x73   : > { %1708 = vset.pattern.permute.xlu1 %v1887_v15 }
  0x74   : > { %799 = vperm.xlu1 %1708, %v237_v16  }
  0x78   : > { %803 = vperm.xlu1 %1708, %v238_v17  }
  0x7c   : > { %1709 = vset.pattern.permute.xlu1 %v1888_v18 }
  0x7d   : > { %935 = vperm.xlu1 %1709, %v2060_v12  }
  0x81   : > { %943 = vperm.xlu1 %1709, %v236_v14   ;;  %v256_v19 = vpop.permute.xlu0 %255  ;;  %v260_v20 = vpop.permute.xlu1 %259 }
  0x82   : > { %1517 = vmatprep.mubr.msk.f32.mxu0 %vm287_vm0, %v256_v19 }
  0x85   : > { %951 = vperm.xlu1 %1709, %v238_v17   ;;  %v258_v21 = vpop.permute.xlu0 %257  ;;  %v262_v22 = vpop.permute.xlu1 %261 }
  0x86   : > { %1518 = vmatmul.mubr.msk.f32.vlgmr.msra.gmra.mrb[0].mxu0 %vm287_vm0, %v258_v21 }
  0x87   : > { %1520 = vmatprep.mubr.msk.f32.mxu0 %vm287_vm0, %v260_v20 }
  0x89   : > { %v264_v23 = vpop.permute.xlu0 %263  ;;  %v266_v24 = vpop.permute.xlu1 %265 }
  0x8a   : > { %1521 = vmatmul.mubr.msk.f32.gmra.mrb[2].mxu0 %vm287_vm0, %v262_v22 }
  0x8b   : > { %1523 = vmatprep.mubr.msk.f32.mxu0 %vm287_vm0, %v264_v23 }
  0x8e   : > { %1524 = vmatmul.mubr.msk.f32.gmra.mrb[4].mxu0 %vm287_vm0, %v266_v24 }
  0x8f   : > { %v268_v25 = vpop.permute.xlu0 %267 }
  0x90   : > { %v270_v26 = vpop.permute.xlu1 %269  ;;  %1526 = vmatprep.mubr.msk.f32.mxu0 %vm287_vm0, %v268_v25 }
  0x92   : > { %1527 = vmatmul.mubr.msk.f32.gmra.mrb[6].mxu0 %vm287_vm0, %v270_v26 }
  0x93   : > { %v272_v27 = vpop.permute.xlu0 %271 }
  0x94   : > { %v274_v28 = vpop.permute.xlu1 %273  ;;  %1529 = vmatprep.mubr.msk.f32.mxu0 %vm287_vm0, %v272_v27 }
  0x96   : > { %1530 = vmatmul.mubr.msk.f32.gmra.mrb[8].mxu0 %vm287_vm0, %v274_v28 }
  0x97   : > { %v276_v29 = vpop.permute.xlu0 %275 }
  0x98   : > { %v278_v30 = vpop.permute.xlu1 %277  ;;  %1532 = vmatprep.mubr.msk.f32.mxu0 %vm287_vm0, %v276_v29 }
  0x9a   : > { %1533 = vmatmul.mubr.msk.f32.gmra.mrb[10].mxu0 %vm287_vm0, %v278_v30 }
  0x9b   : > { %v280_v31 = vpop.permute.xlu0 %279 }
  0x9c   : > { %v282_v32 = vpop.permute.xlu1 %281  ;;  %1535 = vmatprep.mubr.msk.f32.mxu0 %vm287_vm0, %v280_v31 }
  0x9e   : > { %1536 = vmatmul.mubr.msk.f32.gmra.mrb[12].mxu0 %vm287_vm0, %v282_v32 }
  0x9f   : > { %v284_v33 = vpop.permute.xlu0 %283 }
  0xa0   : > { %v286_v34 = vpop.permute.xlu1 %285  ;;  %1538 = vmatprep.mubr.msk.f32.mxu0 %vm287_vm0, %v284_v33 }
  0xa2   : > { %1539 = vmatmul.mubr.msk.f32.gmra.mrb[14].mxu0 %vm287_vm0, %v286_v34 }
  0xa3   : > { %1599 = vmatprep.mubr.msk.f32.mxu0 %vm1890_vm2, %v1891_v1 }
  0xb0   : > { %v2171_v59 = vpop.permute.xlu0 %743 }
  0xb1   : > { %v2157_v52 = vpop.permute.xlu1 %747 }
  0xb4   : > { %v2175_v62 = vpop.permute.xlu0 %755 }
  0xb5   : > { %v2159_v53 = vpop.permute.xlu1 %751 }
  0xb8   : > { %v2185_v3 = vpop.permute.xlu0 %763 }
  0xb9   : > { %v2161_v54 = vpop.permute.xlu1 %759 }
  0xbc   : > { %v2200_v21 = vpop.permute.xlu0 %775 }
  0xbe   : > { %v2163_v55 = vpop.permute.xlu1 %891 }
  0xc3   : > { %v2165_v56 = vpop.permute.xlu1 %767 }
  0xc7   : > { %v2167_v57 = vpop.permute.xlu1 %771 }
  0xcc   : > { %v2169_v58 = vpop.permute.xlu1 %903 }
  0xd1   : > { %v2173_v61 = vpop.permute.xlu1 %779 }
  0xd6   : > { %v2178_v0 = vpop.permute.xlu1 %907 }
  0xdb   : > { %v2192_v13 = vpop.permute.xlu1 %783 }
  0xdf   : > { %v2220_v34 = vpop.permute.xlu1 %787 }
  0xf0   : > { %v1545_v35 = vpop.f32.mrb[0].mxu1 }
  0xf1   : > { %v567_v36 = vpop.f32.mrb[1].mxu1  ;;  %v2194_v14 = vmul.f32 2.0, %v1545_v35 }
  0xf2   : > { %v2196_v17 = vmul.f32 2.0, %v567_v36 }
  0xf4   : > { %v1548_v37 = vpop.f32.mrb[2].mxu1 }
  0xf5   : > { %v2130_v38 = vpop.f32.mrb[3].mxu1  ;;  %v2198_v18 = vmul.f32 2.0, %v1548_v37 }
  0xf6   : > { %v2205_v25 = vmul.f32 2.0, %v2130_v38 }
  0xf8   : > { %v2132_v39 = vpop.f32.mrb[4].mxu1 }
  0xf9   : > { %v2134_v40 = vpop.f32.mrb[5].mxu1  ;;  %v2208_v26 = vmul.f32 2.0, %v2132_v39 }
  0xfa   : > { %v2215_v30 = vmul.f32 2.0, %v2134_v40 }
  0xfc   : > { %v2136_v41 = vpop.f32.mrb[6].mxu1 }
  0xfd   : > { %v2138_v42 = vpop.f32.mrb[7].mxu1  ;;  %v2218_v31 = vmul.f32 2.0, %v2136_v41 }
  0xfe   : > { %v2223_v35 = vmul.f32 2.0, %v2138_v42  ;;  %v2239_v42 = vpop.permute.xlu0 %791 }
 0x100   : > { %v2140_v43 = vpop.f32.mrb[8].mxu1 }
 0x101   : > { %v2142_v44 = vpop.f32.mrb[9].mxu1  ;;  %v2234_v41 = vmul.f32 2.0, %v2140_v43 }
 0x102   : > { %v2237_v60 = vmul.f32 2.0, %v2142_v44 }
 0x104   : > { %v2144_v45 = vpop.f32.mrb[10].mxu1 }
 0x105   : > { %v2146_v46 = vpop.f32.mrb[11].mxu1  ;;  %v2246_v2 = vmul.f32 2.0, %v2144_v45 }
 0x108   : > { %v2148_v47 = vpop.f32.mrb[12].mxu1 }
 0x109   : > { %v2150_v48 = vpop.f32.mrb[13].mxu1 }
 0x10c   : > { %v2152_v49 = vpop.f32.mrb[14].mxu1 }
 0x10d   : > { %v2154_v50 = vpop.f32.mrb[15].mxu1 }
 0x159   : > { %v1519_v4 = vpop.f32.mrb[0].mxu0 }
 0x15a   : > { %v647_v5 = vand.u32 2147483647, %v1519_v4  ;;  %vm679_vm3 = vcmp.lt.f32.partialorder %v1519_v4, 0.0  ;;  %v390_v7 = vpop.f32.mrb[1].mxu0 }
 0x15b   : > { %v695_v9 = vsel %vm679_vm3, -1e-08, %v1892_v8  ;;  %v646_v10 = vand.u32 2147483647, %v390_v7  ;;  %vm678_vm4 = vcmp.lt.f32.partialorder %v390_v7, 0.0 }
 0x15c   : > { %vm663_vm5 = vcmp.lt.f32.partialorder %v647_v5, 1e-08  ;;  %v694_v12 = vsel %vm678_vm4, -1e-08, %v1892_v8  ;;  %v2252_v5 = vmul.f32 2.0, %v2148_v47 }
 0x15d   : > { %v711_v15 = vsel %vm663_vm5, %v695_v9, %v1519_v4  ;;  %vm662_vm6 = vcmp.lt.f32.partialorder %v646_v10, 1e-08  ;;  %v1522_v16 = vpop.f32.mrb[2].mxu0  ;;  %v2249_v4 = vmul.f32 2.0, %v2146_v46 }
 0x15e   : > { %1710 = vrcp.f32 %v711_v15  ;;  %v710_v19 = vsel %vm662_vm6, %v694_v12, %v390_v7  ;;  %v649_v20 = vand.u32 2147483647, %v1522_v16  ;;  %vm681_vm7 = vcmp.lt.f32.partialorder %v1522_v16, 0.0  ;;  %v400_v6 = vpop.f32.mrb[3].mxu0  ;;  %v2264_v15 = vpop.permute.xlu1 %919 }
 0x15f   : > { %1712 = vrcp.f32 %v710_v19  ;;  %v697_v22 = vsel %vm681_vm7, -1e-08, %v1892_v8  ;;  %v648_v23 = vand.u32 2147483647, %v400_v6  ;;  %vm680_vm8 = vcmp.lt.f32.partialorder %v400_v6, 0.0 }
 0x160   : > { %vm665_vm9 = vcmp.lt.f32.partialorder %v649_v20, 1e-08  ;;  %v696_v24 = vsel %vm680_vm8, -1e-08, %v1892_v8  ;;  %v2270_v19 = vmul.f32 2.0, %v2152_v49 }
 0x161   : > { %v713_v27 = vsel %vm665_vm9, %v697_v22, %v1522_v16  ;;  %vm2210_vm10 = vcmp.lt.f32.partialorder %v648_v23, 1e-08  ;;  %v1525_v29 = vpop.f32.mrb[4].mxu0  ;;  %v2267_v16 = vmul.f32 2.0, %v2150_v48  ;;  %v896_v48 = vpop.permute.xlu0 %895 }
 0x162   : > { %1714 = vrcp.f32 %v713_v27  ;;  %v651_v32 = vand.u32 2147483647, %v1525_v29  ;;  %vm683_vm11 = vcmp.lt.f32.partialorder %v1525_v29, 0.0  ;;  %v410_v33 = vpop.f32.mrb[5].mxu0  ;;  %v712_v36 = vsel %vm2210_vm10, %v696_v24, %v400_v6 }
 0x163   : > { %v699_v37 = vsel %vm683_vm11, -1e-08, %v1892_v8  ;;  %v650_v38 = vand.u32 2147483647, %v410_v33  ;;  %vm682_vm12 = vcmp.lt.f32.partialorder %v410_v33, 0.0  ;;  %1716 = vrcp.f32 %v712_v36 }
 0x164   : > { %vm2228_vm13 = vcmp.lt.f32.partialorder %v651_v32, 1e-08  ;;  %v698_v40 = vsel %vm682_vm12, -1e-08, %v1892_v8 }
 0x165   : > { %vm2241_vm14 = vcmp.lt.f32.partialorder %v650_v38, 1e-08  ;;  %v1528_v1 = vpop.f32.mrb[6].mxu0  ;;  %v715_v43 = vsel %vm2228_vm13, %v699_v37, %v1525_v29 }
 0x166   : > { %v653_v44 = vand.u32 2147483647, %v1528_v1  ;;  %vm685_vm15 = vcmp.lt.f32.partialorder %v1528_v1, 0.0  ;;  %v420_v7 = vpop.f32.mrb[7].mxu0  ;;  %v714_v9 = vsel %vm2241_vm14, %v698_v40, %v410_v33  ;;  %1718 = vrcp.f32 %v715_v43 }
 0x167   : > { %v701_v10 = vsel %vm685_vm15, -1e-08, %v1892_v8  ;;  %v652_v45 = vand.u32 2147483647, %v420_v7  ;;  %vm684_vm0 = vcmp.lt.f32.partialorder %v420_v7, 0.0  ;;  %1720 = vrcp.f32 %v714_v9 }
 0x168   : > { %v1711_v12 = vpop.eup %1710  ;;  %vm2259_vm1 = vcmp.lt.f32.partialorder %v653_v44, 1e-08  ;;  %v700_v47 = vsel %vm684_vm0, -1e-08, %v1892_v8 }
 0x169   : > { %v1713_v20 = vpop.eup %1712  ;;  %v717_v6 = vsel %vm2259_vm1, %v701_v10, %v1528_v1  ;;  %vm668_vm2 = vcmp.lt.f32.partialorder %v652_v45, 1e-08  ;;  %v1531_v22 = vpop.f32.mrb[8].mxu0  ;;  %v2275_v23 = vmul.f32 %v1711_v12, %v2157_v52 }
 0x16a   : > { %v716_v24 = vsel %vm668_vm2, %v700_v47, %v420_v7  ;;  %v655_v27 = vand.u32 2147483647, %v1531_v22  ;;  %vm687_vm3 = vcmp.lt.f32.partialorder %v1531_v22, 0.0  ;;  %v430_v28 = vpop.f32.mrb[9].mxu0  ;;  %1722 = vrcp.f32 %v717_v6  ;;  %v2287_v1 = vpop.permute.xlu1 %795 }
 0x16b   : > { %v703_v49 = vsel %vm687_vm3, -1e-08, %v1892_v8  ;;  %v827_v29 = vmul.f32 %v2189_v11, %v2275_v23  ;;  %v654_v32 = vand.u32 2147483647, %v430_v28  ;;  %1724 = vrcp.f32 %v716_v24  ;;  %v900_v12 = vpop.permute.xlu0 %899 }
 0x16c   : > { %v1715_v33 = vpop.eup %1714  ;;  %vm671_vm4 = vcmp.lt.f32.partialorder %v655_v27, 1e-08  ;;  %vm686_vm5 = vcmp.lt.f32.partialorder %v430_v28, 0.0  ;;  %v2281_v52 = vmul.f32 %v1713_v20, %v2171_v59  ;;  %vm1179_vm3 = vcmp.gt.f32.partialorder %v2275_v23, 0.0 }
 0x16d   : > { %v719_v36 = vsel %vm671_vm4, %v703_v49, %v1531_v22  ;;  %v859_v37 = vsub.f32 %v827_v29, %v2194_v14  ;;  %vm670_vm6 = vcmp.lt.f32.partialorder %v654_v32, 1e-08  ;;  %v702_v38 = vsel %vm686_vm5, -1e-08, %v1892_v8  ;;  %v1534_v39 = vpop.f32.mrb[10].mxu0  ;;  %v1717_v14 = vpop.eup %1716 }
 0x16e   : > { %1726 = vrcp.f32 %v719_v36  ;;  %v718_v40 = vsel %vm670_vm6, %v702_v38, %v430_v28  ;;  %v826_v63 = vmul.f32 %v2189_v11, %v2281_v52  ;;  %v657_v43 = vand.u32 2147483647, %v1534_v39  ;;  %v440_v44 = vpop.f32.mrb[11].mxu0 }
 0x16f   : > { %v875_v7 = vmul.f32 %v859_v37, %v2275_v23  ;;  %1728 = vrcp.f32 %v718_v40  ;;  %vm689_vm7 = vcmp.lt.f32.partialorder %v1534_v39, 0.0  ;;  %v2291_v59 = vmul.f32 %v1715_v33, %v2175_v62  ;;  %v2306_v33 = vpop.permute.xlu1 %923 }
 0x170   : > { %v858_v9 = vsub.f32 %v826_v63, %v2196_v17  ;;  %vm673_vm8 = vcmp.lt.f32.partialorder %v657_v43, 1e-08  ;;  %v705_v10 = vsel %vm689_vm7, -1e-08, %v1892_v8  ;;  %v656_v45 = vand.u32 2147483647, %v440_v44  ;;  %v1719_v17 = vpop.eup %1718 }
 0x171   : > { %v955_v46 = vadd.f32 %v896_v48, %v875_v7  ;;  %v721_v47 = vsel %vm673_vm8, %v705_v10, %v1534_v39  ;;  %v829_v20 = vmul.f32 %v2189_v11, %v2291_v59  ;;  %vm688_vm9 = vcmp.lt.f32.partialorder %v440_v44, 0.0  ;;  %v1537_v6 = vpop.f32.mrb[12].mxu0  ;;  %v1721_v29 = vpop.eup %1720 }
 0x172   : > { %v874_v22 = vmul.f32 %v858_v9, %v2281_v52  ;;  %1730 = vrcp.f32 %v721_v47  ;;  %vm672_vm10 = vcmp.lt.f32.partialorder %v656_v45, 1e-08  ;;  %v704_v62 = vsel %vm688_vm9, -1e-08, %v1892_v8  ;;  %v450_v24 = vpop.f32.mrb[13].mxu0 }
 0x173   : > { %v2299_v27 = vmax.f32 %v955_v46, 0.0  ;;  %v861_v28 = vsub.f32 %v829_v20, %v2198_v18  ;;  %v720_v49 = vsel %vm672_vm10, %v704_v62, %v440_v44  ;;  %v2303_v48 = vmul.f32 %v1717_v14, %v2159_v53  ;;  %v912_v14 = vpop.permute.xlu0 %911 }
 0x174   : > { %v954_v32 = vadd.f32 %v2163_v55, %v874_v22  ;;  %1732 = vrcp.f32 %v720_v49  ;;  %v659_v36 = vand.u32 2147483647, %v1537_v6  ;;  %vm691_vm11 = vcmp.lt.f32.partialorder %v1537_v6, 0.0  ;;  %v1723_v37 = vpop.eup %1722 }
 0x175   : > { %1734 = vrsqrt.f32 %v2299_v27  ;;  %v877_v38 = vmul.f32 %v861_v28, %v2291_v59  ;;  %v828_v18 = vmul.f32 %v2189_v11, %v2303_v48  ;;  %v707_v39 = vsel %vm691_vm11, -1e-08, %v1892_v8  ;;  %v1540_v53 = vpop.f32.mrb[14].mxu0  ;;  %v1725_v40 = vpop.eup %1724 }
 0x176   : > { %v2313_v63 = vmax.f32 %v954_v32, 0.0  ;;  %vm2315_vm12 = vcmp.lt.f32.partialorder %v659_v36, 1e-08  ;;  %v2320_v43 = vmul.f32 %v1719_v17, %v2185_v3  ;;  %v658_v44 = vand.u32 2147483647, %v450_v24  ;;  %v460_v7 = vpop.f32.mrb[15].mxu0  ;;  %v2337_v17 = vpop.permute.xlu1 %799 }
 0x177   : > { %v957_v9 = vadd.f32 %v2169_v58, %v877_v38  ;;  %v860_v10 = vsub.f32 %v828_v18, %v2205_v25  ;;  %v723_v45 = vsel %vm2315_vm12, %v707_v39, %v1537_v6  ;;  %vm690_vm13 = vcmp.lt.f32.partialorder %v450_v24, 0.0 }
 0x178   : > { %v1727_v46 = vpop.eup %1726  ;;  %1736 = vrsqrt.f32 %v2313_v63  ;;  %v831_v47 = vmul.f32 %v2189_v11, %v2320_v43  ;;  %vm674_vm14 = vcmp.lt.f32.partialorder %v658_v44, 1e-08  ;;  %v706_v3 = vsel %vm690_vm13, -1e-08, %v1892_v8 }
 0x179   : > { %v1729_v20 = vpop.eup %1728  ;;  %v2330_v22 = vmax.f32 %v957_v9, 0.0  ;;  %v876_v58 = vmul.f32 %v860_v10, %v2303_v48  ;;  %1738 = vrcp.f32 %v723_v45  ;;  %v722_v25 = vsel %vm674_vm14, %v706_v3, %v450_v24  ;;  %v916_v24 = vpop.permute.xlu0 %915 }
 0x17a   : > { %v863_v62 = vsub.f32 %v831_v47, %v2208_v26  ;;  %1740 = vrcp.f32 %v722_v25  ;;  %v2335_v6 = vmul.f32 %v1721_v29, %v2161_v54  ;;  %v661_v28 = vand.u32 2147483647, %v1540_v53  ;;  %v804_v3 = vpop.permute.xlu1 %803 }
 0x17b   : > { %1742 = vrsqrt.f32 %v2330_v22  ;;  %v956_v49 = vadd.f32 %v900_v12, %v876_v58  ;;  %vm693_vm15 = vcmp.lt.f32.partialorder %v1540_v53, 0.0  ;;  %v2341_v32 = vmul.f32 %v1723_v37, %v2167_v57 }
 0x17c   : > { %v1731_v36 = vpop.eup %1730  ;;  %v879_v38 = vmul.f32 %v863_v62, %v2320_v43  ;;  %v830_v26 = vmul.f32 %v2189_v11, %v2335_v6  ;;  %vm677_vm0 = vcmp.lt.f32.partialorder %v661_v28, 1e-08  ;;  %v709_v54 = vsel %vm693_vm15, -1e-08, %v1892_v8 }
 0x17d   : > { %v2347_v29 = vmax.f32 %v956_v49, 0.0  ;;  %v725_v18 = vsel %vm677_vm0, %v709_v54, %v1540_v53  ;;  %v833_v12 = vmul.f32 %v2189_v11, %v2341_v32  ;;  %v660_v39 = vand.u32 2147483647, %v460_v7  ;;  %v928_v28 = vpop.permute.xlu0 %927 }
 0x17e   : > { %v1733_v55 = vpop.eup %1732  ;;  %v959_v57 = vadd.f32 %v912_v14, %v879_v38  ;;  %v862_v37 = vsub.f32 %v830_v26, %v2215_v30  ;;  %1744 = vrcp.f32 %v725_v18  ;;  %vm692_vm1 = vcmp.lt.f32.partialorder %v460_v7, 0.0 }
 0x17f   : > { %v1735_v44 = vpop.eup %1734  ;;  %1746 = vrsqrt.f32 %v2347_v29  ;;  %v865_v9 = vsub.f32 %v833_v12, %v2218_v31  ;;  %vm676_vm2 = vcmp.lt.f32.partialorder %v660_v39, 1e-08  ;;  %v708_v10 = vsel %vm692_vm1, -1e-08, %v1892_v8  ;;  %v936_v39 = vpop.permute.xlu1 %935 }
 0x180   : > { %v2355_v45 = vmax.f32 %v959_v57, 0.0  ;;  %v878_v53 = vmul.f32 %v862_v37, %v2335_v6  ;;  %v724_v47 = vsel %vm676_vm2, %v708_v10, %v460_v7  ;;  %v2359_v14 = vmul.f32 2.0, %v2154_v50 }
 0x181   : > { %v881_v30 = vmul.f32 %v865_v9, %v2341_v32  ;;  %1748 = vrcp.f32 %v724_v47  ;;  %v2363_v58 = vmul.f32 %v1725_v40, %v2165_v56  ;;  %v2366_v31 = vmul.f32 %v1727_v46, %v2173_v61  ;;  %v932_v9 = vpop.permute.xlu0 %931 }
 0x182   : > { %v1737_v25 = vpop.eup %1736  ;;  %1750 = vrsqrt.f32 %v2355_v45  ;;  %v958_v8 = vadd.f32 %v2178_v0, %v878_v53  ;;  %v2371_v7 = vmul.f32 %v1729_v20, %v2200_v21  ;;  %v2374_v50 = vmul.f32 %v1731_v36, %v2220_v34 }
 0x183   : > { %v1739_v62 = vpop.eup %1738  ;;  %v2377_v49 = vmul.f32 %v1735_v44, %v2299_v27  ;;  %v961_v56 = vadd.f32 %v2264_v15, %v881_v30  ;;  %v832_v61 = vmul.f32 %v2189_v11, %v2363_v58  ;;  %v835_v40 = vmul.f32 %v2189_v11, %v2366_v31 }
 0x184   : > { %v1741_v0 = vpop.eup %1740  ;;  %v2384_v46 = vmax.f32 %v958_v8, 0.0  ;;  %v834_v21 = vmul.f32 %v2189_v11, %v2371_v7  ;;  %v837_v34 = vmul.f32 %v2189_v11, %v2374_v50  ;;  %v2391_v20 = vmul.f32 %v1733_v55, %v2192_v13 }
 0x185   : > { %v1743_v36 = vpop.eup %1742  ;;  %v2393_v15 = vmax.f32 %v961_v56, 0.0  ;;  %v864_v38 = vsub.f32 %v832_v61, %v2223_v35  ;;  %v867_v26 = vsub.f32 %v835_v40, %v2234_v41  ;;  %v2398_v54 = vmul.f32 %v1739_v62, %v2287_v1 }
 0x186   : > { %v987_v18 = vmul.f32 %v1737_v25, %v2313_v63  ;;  %1752 = vrsqrt.f32 %v2384_v46  ;;  %v866_v12 = vsub.f32 %v834_v21, %v2237_v60  ;;  %v869_v13 = vsub.f32 %v837_v34, %v2246_v2 }
 0x187   : > { %1754 = vrsqrt.f32 %v2393_v15  ;;  %v880_v55 = vmul.f32 %v864_v38, %v2363_v58  ;;  %v883_v35 = vmul.f32 %v867_v26, %v2366_v31  ;;  %v836_v41 = vmul.f32 %v2189_v11, %v2391_v20 }
 0x188   : > { %v1745_v1 = vpop.eup %1744  ;;  %v882_v57 = vmul.f32 %v866_v12, %v2371_v7  ;;  %v885_v37 = vmul.f32 %v869_v13, %v2374_v50  ;;  %v839_v60 = vmul.f32 %v2189_v11, %v2398_v54  ;;  %v2414_v44 = vmul.f32 %v1741_v0, %v2239_v42  ;;  %v940_v13 = vpop.permute.xlu0 %939 }
 0x189   : > { %v1747_v2 = vpop.eup %1746  ;;  %v960_v10 = vadd.f32 %v916_v24, %v880_v55  ;;  %v2416_v53 = vmul.f32 %v1745_v1, %v804_v3  ;;  %v963_v47 = vadd.f32 %v928_v28, %v883_v35  ;;  %v868_v30 = vsub.f32 %v836_v41, %v2249_v4 }
 0x18a   : > { %v2420_v25 = vmul.f32 %v1743_v36, %v2330_v22  ;;  %v962_v8 = vadd.f32 %v2306_v33, %v882_v57  ;;  %v965_v62 = vadd.f32 %v936_v39, %v885_v37  ;;  %v871_v56 = vsub.f32 %v839_v60, %v2252_v5  ;;  %v944_v33 = vpop.permute.xlu1 %943 }
 0x18b   : > { %v1749_v61 = vpop.eup %1748  ;;  %v1001_v42 = vmul.f32 %v1747_v2, %v2347_v29  ;;  %v2425_v40 = vmax.f32 %v960_v10, 0.0  ;;  %v2427_v0 = vmax.f32 %v963_v47, 0.0  ;;  %v884_v24 = vmul.f32 %v868_v30, %v2391_v20 }
 0x18c   : > { %v1751_v4 = vpop.eup %1750  ;;  %v2431_v3 = vmax.f32 %v962_v8, 0.0  ;;  %v2433_v28 = vmax.f32 %v965_v62, 0.0  ;;  %v887_v21 = vmul.f32 %v871_v56, %v2398_v54  ;;  %v838_v5 = vmul.f32 %v2189_v11, %v2414_v44  ;;  %v948_v56 = vpop.permute.xlu0 %947 }
 0x18d   : > { %v2439_v34 = vmul.f32 %v1751_v4, %v2355_v45  ;;  %1756 = vrsqrt.f32 %v2425_v40  ;;  %v964_v36 = vadd.f32 %v932_v9, %v884_v24  ;;  %v841_v38 = vmul.f32 %v2189_v11, %v2416_v53 }
 0x18e   : > { %1758 = vrsqrt.f32 %v2427_v0  ;;  %v967_v26 = vadd.f32 %v944_v33, %v887_v21  ;;  %v870_v12 = vsub.f32 %v838_v5, %v2267_v16  ;;  %v2447_v39 = vmul.f32 %v1749_v61, %v2337_v17  ;;  %v952_v10 = vpop.permute.xlu1 %951 }
 0x18f   : > { %1760 = vrsqrt.f32 %v2431_v3  ;;  %v2450_v55 = vmax.f32 %v964_v36, 0.0  ;;  %v873_v35 = vsub.f32 %v841_v38, %v2270_v19  ;;  %vm988_vm4 = vcmp.eq.f32.partialorder %v2313_v63, inf }
 0x190   : > { %v1753_v41 = vpop.eup %1752  ;;  %1762 = vrsqrt.f32 %v2433_v28  ;;  %v2455_v1 = vmax.f32 %v967_v26, 0.0  ;;  %v886_v57 = vmul.f32 %v870_v12, %v2414_v44  ;;  %v840_v16 = vmul.f32 %v2189_v11, %v2447_v39 }
 0x191   : > { %v1755_v17 = vpop.eup %1754  ;;  %v2461_v37 = vmul.f32 %v1753_v41, %v2384_v46  ;;  %1764 = vrsqrt.f32 %v2450_v55  ;;  %v889_v19 = vmul.f32 %v873_v35, %v2416_v53  ;;  %v989_v60 = vsel %vm988_vm4, %v2313_v63, %v987_v18 }
 0x192   : > { %v2467_v2 = vmul.f32 %v1755_v17, %v2393_v15  ;;  %1766 = vrsqrt.f32 %v2455_v1  ;;  %v966_v9 = vadd.f32 %v940_v13, %v886_v57  ;;  %v872_v47 = vsub.f32 %v840_v16, %v2359_v14 }
 0x193   : > { %v969_v11 = vadd.f32 %v952_v10, %v889_v19  ;;  %vm990_vm5 = vcmp.eq.f32.partialorder %v2313_v63, 0.0  ;;  %v991_v30 = vand.u32 2147483648, %v2313_v63  ;;  %vm995_vm6 = vcmp.eq.f32.partialorder %v2299_v27, inf }
 0x194   : > { %v2474_v8 = vmax.f32 %v966_v9, 0.0  ;;  %v888_v18 = vmul.f32 %v872_v47, %v2447_v39  ;;  %v996_v62 = vsel %vm995_vm6, %v2299_v27, %v2377_v49  ;;  %vm997_vm7 = vcmp.eq.f32.partialorder %v2299_v27, 0.0 }
 0x195   : > { %v2480_v61 = vmax.f32 %v969_v11, 0.0  ;;  %v992_v14 = vsel %vm990_vm5, %v991_v30, %v989_v60  ;;  %v998_v24 = vand.u32 2147483648, %v2299_v27  ;;  %vm1178_vm8 = vcmp.gt.f32.partialorder %v2281_v52, 0.0 }
 0x196   : > { %1768 = vrsqrt.f32 %v2474_v8  ;;  %v968_v63 = vadd.f32 %v948_v56, %v888_v18  ;;  %v1098_v4 = vsub.f32 0.02, %v992_v14  ;;  %vm2487_vm9 = vmpackc.low %vm1179_vm3, %vm1178_vm8  ;;  %vm1002_vm10 = vcmp.eq.f32.partialorder %v2347_v29, inf }
 0x197   : > { %v1757_v49 = vpop.eup %1756  ;;  %1770 = vrsqrt.f32 %v2480_v61  ;;  %v999_v21 = vsel %vm997_vm7, %v998_v24, %v996_v62  ;;  %v1003_v27 = vsel %vm1002_vm10, %v2347_v29, %v1001_v42  ;;  %vm1004_vm11 = vcmp.eq.f32.partialorder %v2347_v29, 0.0 }
 0x198   : > { %v1759_v52 = vpop.eup %1758  ;;  %v1029_v5 = vmul.f32 %v1757_v49, %v2425_v40  ;;  %v2496_v36 = vmax.f32 %v968_v63, 0.0  ;;  %v1099_v23 = vsub.f32 0.02, %v999_v21  ;;  %v1114_v38 = vmul.f32 200.0, %v1098_v4 }
 0x199   : > { %v1761_v26 = vpop.eup %1760  ;;  %v2499_v12 = vmul.f32 %v1759_v52, %v2427_v0  ;;  %v1005_v13 = vand.u32 2147483648, %v2347_v29  ;;  %vm1009_vm12 = vcmp.eq.f32.partialorder %v2330_v22, inf  ;;  %vm1011_vm13 = vcmp.eq.f32.partialorder %v2330_v22, 0.0 }
 0x19a   : > { %v1763_v42 = vpop.eup %1762  ;;  %v2505_v35 = vmul.f32 %v1761_v26, %v2431_v3  ;;  %1772 = vrsqrt.f32 %v2496_v36  ;;  %v1115_v41 = vmul.f32 200.0, %v1099_v23  ;;  %v1010_v57 = vsel %vm1009_vm12, %v2330_v22, %v2420_v25 }
 0x19b   : > { %v1765_v16 = vpop.eup %1764  ;;  %v2511_v17 = vmul.f32 %v1763_v42, %v2433_v28  ;;  %1774 = vtanh.f32 %v1114_v38  ;;  %v1006_v19 = vsel %vm1004_vm11, %v1005_v13, %v1003_v27  ;;  %v1012_v60 = vand.u32 2147483648, %v2330_v22 }
 0x19c   : > { %v1767_v9 = vpop.eup %1766  ;;  %v2517_v10 = vmul.f32 %v1765_v16, %v2450_v55  ;;  %1776 = vtanh.f32 %v1115_v41  ;;  %v1100_v47 = vsub.f32 0.02, %v1006_v19  ;;  %vm1180_vm14 = vcmp.gt.f32.partialorder %v2303_v48, 0.0 }
 0x19d   : > { %v2521_v25 = vmul.f32 %v1767_v9, %v2455_v1  ;;  %v1013_v11 = vsel %vm1011_vm13, %v1012_v60, %v1010_v57  ;;  %vm1181_vm15 = vcmp.gt.f32.partialorder %v2291_v59, 0.0  ;;  %vm1016_vm0 = vcmp.eq.f32.partialorder %v2384_v46, inf }
 0x19e   : > { %v1101_v29 = vsub.f32 0.02, %v1013_v11  ;;  %v1116_v30 = vmul.f32 200.0, %v1100_v47  ;;  %vm2527_vm1 = vmpackc.low %vm1181_vm15, %vm1180_vm14  ;;  %v1017_v62 = vsel %vm1016_vm0, %v2384_v46, %v2461_v37  ;;  %vm1018_vm2 = vcmp.eq.f32.partialorder %v2384_v46, 0.0 }
 0x19f   : > { %v1019_v48 = vand.u32 2147483648, %v2384_v46  ;;  %vm1023_vm3 = vcmp.eq.f32.partialorder %v2355_v45, inf  ;;  %vm1025_vm4 = vcmp.eq.f32.partialorder %v2355_v45, 0.0  ;;  %v1026_v59 = vand.u32 2147483648, %v2355_v45 }
 0x1a0   : > { %v1769_v22 = vpop.eup %1768  ;;  %v1117_v56 = vmul.f32 200.0, %v1101_v29  ;;  %1778 = vtanh.f32 %v1116_v30  ;;  %v1024_v14 = vsel %vm1023_vm3, %v2355_v45, %v2439_v34  ;;  %vm1182_vm5 = vcmp.gt.f32.partialorder %v2335_v6, 0.0 }
 0x1a1   : > { %v1771_v24 = vpop.eup %1770  ;;  %v2542_v37 = vmul.f32 %v1769_v22, %v2474_v8  ;;  %v1020_v63 = vsel %vm1018_vm2, %v1019_v48, %v1017_v62  ;;  %v1027_v46 = vsel %vm1025_vm4, %v1026_v59, %v1024_v14  ;;  %vm1183_vm6 = vcmp.gt.f32.partialorder %v2320_v43, 0.0 }
 0x1a2   : > { %v2546_v4 = vmul.f32 %v1771_v24, %v2480_v61  ;;  %1780 = vtanh.f32 %v1117_v56  ;;  %v1102_v49 = vsub.f32 0.02, %v1020_v63  ;;  %v1103_v21 = vsub.f32 0.02, %v1027_v46  ;;  %vm2548_vm7 = vmpackc.low %vm1183_vm6, %vm1182_vm5 }
 0x1a3   : > { %vm1030_vm8 = vcmp.eq.f32.partialorder %v2425_v40, inf  ;;  %vm1032_vm10 = vcmp.eq.f32.partialorder %v2425_v40, 0.0  ;;  %v1033_v6 = vand.u32 2147483648, %v2425_v40  ;;  %vm1037_vm11 = vcmp.eq.f32.partialorder %v2393_v15, inf }
 0x1a4   : > { %v1773_v45 = vpop.eup %1772  ;;  %v1118_v43 = vmul.f32 200.0, %v1102_v49  ;;  %v1119_v34 = vmul.f32 200.0, %v1103_v21  ;;  %v1031_v52 = vsel %vm1030_vm8, %v2425_v40, %v1029_v5  ;;  %v1038_v23 = vsel %vm1037_vm11, %v2393_v15, %v2467_v2 }
 0x1a5   : > { %v1775_v38 = vpop.eup %1774  ;;  %v2560_v26 = vmul.f32 %v1773_v45, %v2496_v36  ;;  %v1034_v13 = vsel %vm1032_vm10, %v1033_v6, %v1031_v52  ;;  %vm1039_vm12 = vcmp.eq.f32.partialorder %v2393_v15, 0.0  ;;  %v1040_v42 = vand.u32 2147483648, %v2393_v15 }
 0x1a6   : > { %v1777_v41 = vpop.eup %1776  ;;  %v1146_v57 = vadd.f32 1.0, %v1775_v38  ;;  %1782 = vtanh.f32 %v1118_v43  ;;  %v1104_v16 = vsub.f32 0.02, %v1034_v13  ;;  %vm1184_vm13 = vcmp.gt.f32.partialorder %v2363_v58, 0.0 }
 0x1a7   : > { %v1147_v19 = vadd.f32 1.0, %v1777_v41  ;;  %1784 = vtanh.f32 %v1119_v34  ;;  %v1041_v40 = vsel %vm1039_vm12, %v1040_v42, %v1038_v23  ;;  %vm1185_vm14 = vcmp.gt.f32.partialorder %v2341_v32, 0.0 }
 0x1a8   : > { %v1162_v2 = vmul.f32 0.5, %v1146_v57  ;;  %v1105_v5 = vsub.f32 0.02, %v1041_v40  ;;  %v1120_v60 = vmul.f32 200.0, %v1104_v16  ;;  %vm2566_vm15 = vmpackc.low %vm1185_vm14, %vm1184_vm13  ;;  %vm1044_vm0 = vcmp.eq.f32.partialorder %v2431_v3, inf }
 0x1a9   : > { %v1163_v15 = vmul.f32 0.5, %v1147_v19  ;;  %v1045_v47 = vsel %vm1044_vm0, %v2431_v3, %v2505_v35  ;;  %vm1046_vm2 = vcmp.eq.f32.partialorder %v2431_v3, 0.0  ;;  %v1047_v58 = vand.u32 2147483648, %v2431_v3 }
 0x1aa   : > { %v1779_v11 = vpop.eup %1778  ;;  %v1121_v29 = vmul.f32 200.0, %v1105_v5  ;;  %1786 = vtanh.f32 %v1120_v60  ;;  %vm1051_vm3 = vcmp.eq.f32.partialorder %v2427_v0, inf  ;;  %vm1053_vm4 = vcmp.eq.f32.partialorder %v2427_v0, 0.0 }
 0x1ab   : > { %v1603_v32 = vpack.c.bf16 %v1163_v15, %v1162_v2  ;;  %v1148_v30 = vadd.f32 1.0, %v1779_v11  ;;  %v1048_v62 = vsel %vm1046_vm2, %v1047_v58, %v1045_v47  ;;  %v1052_v48 = vsel %vm1051_vm3, %v2427_v0, %v2499_v12 }
 0x1ac   : > { %v1781_v59 = vpop.eup %1780  ;;  %1788 = vtanh.f32 %v1121_v29  ;;  %v1054_v35 = vand.u32 2147483648, %v2427_v0  ;;  %v1106_v22 = vsub.f32 0.02, %v1048_v62  ;;  %vm1186_vm5 = vcmp.gt.f32.partialorder %v2371_v7, 0.0 }
 0x1ad   : > { %1605 = vmatpush3.bf16.msk.msra.mxu0 %vm2487_vm9, %v1603_v32  ;;  %v1149_v3 = vadd.f32 1.0, %v1781_v59  ;;  %v1164_v56 = vmul.f32 0.5, %v1148_v30  ;;  %vm1187_vm6 = vcmp.gt.f32.partialorder %v2366_v31, 0.0  ;;  %vm1058_vm8 = vcmp.eq.f32.partialorder %v2450_v55, inf }
 0x1ae   : > { %1606 = vmatprep.subr.bf16.mxu0 %v1889_v51  ;;  %v1055_v12 = vsel %vm1053_vm4, %v1054_v35, %v1052_v48  ;;  %v1122_v14 = vmul.f32 200.0, %v1106_v22  ;;  %vm2588_vm10 = vmpackc.low %vm1187_vm6, %vm1186_vm5  ;;  %v1059_v7 = vsel %vm1058_vm8, %v2450_v55, %v2517_v10  ;;  %vm1060_vm9 = vcmp.eq.f32.partialorder %v2450_v55, 0.0 }
 0x1af   : > { %v1165_v33 = vmul.f32 0.5, %v1149_v3  ;;  %v1107_v63 = vsub.f32 0.02, %v1055_v12  ;;  %v1061_v31 = vand.u32 2147483648, %v2450_v55  ;;  %vm1065_vm11 = vcmp.eq.f32.partialorder %v2433_v28, inf }
 0x1b0   : > { %v1783_v46 = vpop.eup %1782  ;;  %1790 = vtanh.f32 %v1122_v14  ;;  %v1066_v0 = vsel %vm1065_vm11, %v2433_v28, %v2511_v17  ;;  %vm1067_vm12 = vcmp.eq.f32.partialorder %v2433_v28, 0.0  ;;  %v1068_v49 = vand.u32 2147483648, %v2433_v28 }
 0x1b1   : > { %v1785_v21 = vpop.eup %1784  ;;  %v1607_v6 = vpack.c.bf16 %v1165_v33, %v1164_v56  ;;  %v1150_v10 = vadd.f32 1.0, %v1783_v46  ;;  %v1123_v45 = vmul.f32 200.0, %v1107_v63  ;;  %v1062_v43 = vsel %vm1060_vm9, %v1061_v31, %v1059_v7 }
 0x1b2   : > { %v1151_v34 = vadd.f32 1.0, %v1785_v21  ;;  %v1069_v52 = vsel %vm1067_vm12, %v1068_v49, %v1066_v0  ;;  %v1108_v23 = vsub.f32 0.02, %v1062_v43  ;;  %vm1188_vm13 = vcmp.gt.f32.partialorder %v2391_v20, 0.0 }
 0x1b3   : > { %1609 = vmatpush3.bf16.msk.msra.mxu0 %vm2527_vm1, %v1607_v6  ;;  %v1166_v55 = vmul.f32 0.5, %v1150_v10  ;;  %1792 = vtanh.f32 %v1123_v45  ;;  %v1109_v17 = vsub.f32 0.02, %v1069_v52  ;;  %vm1189_vm14 = vcmp.gt.f32.partialorder %v2374_v50, 0.0 }
 0x1b4   : > { %v1787_v38 = vpop.eup %1786  ;;  %1610 = vmatprep.subr.bf16.mxu0 %v1889_v51  ;;  %v1167_v28 = vmul.f32 0.5, %v1151_v34  ;;  %v1124_v13 = vmul.f32 200.0, %v1108_v23  ;;  %vm2606_vm0 = vmpackc.low %vm1189_vm14, %vm1188_vm13  ;;  %vm1072_vm2 = vcmp.eq.f32.partialorder %v2474_v8, inf  ;;  %vm1074_vm3 = vcmp.eq.f32.partialorder %v2474_v8, 0.0 }
 0x1b5   : > { %v1152_v20 = vadd.f32 1.0, %v1787_v38  ;;  %v1125_v18 = vmul.f32 200.0, %v1109_v17  ;;  %v1073_v41 = vsel %vm1072_vm2, %v2474_v8, %v2542_v37  ;;  %v1075_v50 = vand.u32 2147483648, %v2474_v8  ;;  %v1211_v17 = vld [vmem:[%s2726_s2] sm:$0x7] }
 0x1b6   : > { %v1789_v57 = vpop.eup %1788  ;;  %v1611_v16 = vpack.c.bf16 %v1167_v28, %v1166_v55  ;;  %1794 = vtanh.f32 %v1124_v13  ;;  %vm1079_vm1 = vcmp.eq.f32.partialorder %v2455_v1, inf  ;;  %vm1081_vm4 = vcmp.eq.f32.partialorder %v2455_v1, 0.0  ;;  %v1210_v38 = vld [vmem:[%s2182_s6] sm:$0x7] }
 0x1b7   : > { %v1153_v19 = vadd.f32 1.0, %v1789_v57  ;;  %v1168_v40 = vmul.f32 0.5, %v1152_v20  ;;  %1796 = vtanh.f32 %v1125_v18  ;;  %v1076_v2 = vsel %vm1074_vm3, %v1075_v50, %v1073_v41 }
 0x1b8   : > { %1613 = vmatpush3.bf16.msk.msra.mxu0 %vm2548_vm7, %v1611_v16  ;;  %v1080_v5 = vsel %vm1079_vm1, %v2455_v1, %v2521_v25  ;;  %v1082_v37 = vand.u32 2147483648, %v2455_v1  ;;  %v1110_v8 = vsub.f32 0.02, %v1076_v2  ;;  %vm1190_vm5 = vcmp.gt.f32.partialorder %v2414_v44, 0.0 }
 0x1b9   : > { %1614 = vmatprep.subr.bf16.mxu0 %v1889_v51  ;;  %v1169_v60 = vmul.f32 0.5, %v1153_v19  ;;  %vm1191_vm6 = vcmp.gt.f32.partialorder %v2398_v54, 0.0  ;;  %vm1086_vm8 = vcmp.eq.f32.partialorder %v2496_v36, inf  ;;  %vm1088_vm9 = vcmp.eq.f32.partialorder %v2496_v36, 0.0 }
 0x1ba   : > { %v1791_v15 = vpop.eup %1790  ;;  %v1083_v27 = vsel %vm1081_vm4, %v1082_v37, %v1080_v5  ;;  %v1126_v47 = vmul.f32 200.0, %v1110_v8  ;;  %vm2629_vm7 = vmpackc.low %vm1191_vm6, %vm1190_vm5  ;;  %v1087_v44 = vsel %vm1086_vm8, %v2496_v36, %v2560_v26  ;;  %v1089_v58 = vand.u32 2147483648, %v2496_v36 }
 0x1bb   : > { %v1615_v11 = vpack.c.bf16 %v1169_v60, %v1168_v40  ;;  %v1154_v54 = vadd.f32 1.0, %v1791_v15  ;;  %v1111_v29 = vsub.f32 0.02, %v1083_v27  ;;  %vm1093_vm11 = vcmp.eq.f32.partialorder %v2480_v61, inf }
 0x1bc   : > { %vm1193_vm12 = vcmp.gt.f32.partialorder %v2416_v53, 0.0  ;;  %1798 = vtanh.f32 %v1126_v47  ;;  %v1090_v1 = vsel %vm1088_vm9, %v1089_v58, %v1087_v44  ;;  %v1094_v32 = vsel %vm1093_vm11, %v2480_v61, %v2546_v4 }
 0x1bd   : > { %v1793_v30 = vpop.eup %1792  ;;  %1617 = vmatpush3.bf16.msk.msra.mxu0 %vm2566_vm15, %v1615_v11  ;;  %v1127_v62 = vmul.f32 200.0, %v1111_v29  ;;  %v1096_v26 = vand.u32 2147483648, %v2480_v61  ;;  %v1112_v36 = vsub.f32 0.02, %v1090_v1  ;;  %v1170_v59 = vmul.f32 0.5, %v1154_v54 }
 0x1be   : > { %1618 = vmatprep.subr.bf16.mxu0 %v1889_v51  ;;  %v1155_v48 = vadd.f32 1.0, %v1793_v30  ;;  %vm1095_vm13 = vcmp.eq.f32.partialorder %v2480_v61, 0.0  ;;  %vm1192_vm14 = vcmp.gt.f32.partialorder %v2447_v39, 0.0 }
 0x1bf   : > { %1800 = vtanh.f32 %v1127_v62  ;;  %v1097_v35 = vsel %vm1095_vm13, %v1096_v26, %v1094_v32  ;;  %v1128_v22 = vmul.f32 200.0, %v1112_v36  ;;  %vm2648_vm2 = vmpackc.low %vm1193_vm12, %vm1192_vm14 }
 0x1c0   : > { %v1795_v9 = vpop.eup %1794  ;;  %v1171_v3 = vmul.f32 0.5, %v1155_v48  ;;  %v1113_v56 = vsub.f32 0.02, %v1097_v35 }
 0x1c1   : > { %v1797_v12 = vpop.eup %1796  ;;  %v1156_v14 = vadd.f32 1.0, %v1795_v9  ;;  %1802 = vtanh.f32 %v1128_v22 }
 0x1c2   : > { %v1619_v7 = vpack.c.bf16 %v1171_v3, %v1170_v59  ;;  %v1157_v33 = vadd.f32 1.0, %v1797_v12  ;;  %v1129_v61 = vmul.f32 200.0, %v1113_v56 }
 0x1c3   : > { %v1172_v63 = vmul.f32 0.5, %v1156_v14 }
 0x1c4   : > { %1621 = vmatpush3.bf16.msk.msra.mxu0 %vm2588_vm10, %v1619_v7  ;;  %v1173_v39 = vmul.f32 0.5, %v1157_v33  ;;  %1804 = vtanh.f32 %v1129_v61 }
 0x1c5   : > { %1622 = vmatprep.subr.bf16.mxu0 %v1889_v51 }
 0x1c6   : > { %v1799_v53 = vpop.eup %1798  ;;  %v1623_v31 = vpack.c.bf16 %v1173_v39, %v1172_v63 }
 0x1c7   : > { %v1158_v46 = vadd.f32 1.0, %v1799_v53 }
 0x1c8   : > { %1625 = vmatpush3.bf16.msk.msra.mxu0 %vm2606_vm0, %v1623_v31 }
 0x1c9   : > { %v1801_v0 = vpop.eup %1800  ;;  %1626 = vmatprep.subr.bf16.mxu0 %v1889_v51  ;;  %v1174_v21 = vmul.f32 0.5, %v1158_v46 }
 0x1ca   : > { %v1159_v49 = vadd.f32 1.0, %v1801_v0 }
 0x1cb   : > { %v1803_v6 = vpop.eup %1802 }
 0x1cc   : > { %v1175_v10 = vmul.f32 0.5, %v1159_v49  ;;  %v1160_v24 = vadd.f32 1.0, %v1803_v6 }
 0x1ce   : > { %v1805_v45 = vpop.eup %1804  ;;  %v1627_v43 = vpack.c.bf16 %v1175_v10, %v1174_v21  ;;  %v1176_v52 = vmul.f32 0.5, %v1160_v24 }
 0x1cf   : > { %v1161_v34 = vadd.f32 1.0, %v1805_v45 }
 0x1d0   : > { %1629 = vmatpush3.bf16.msk.msra.mxu0 %vm2629_vm7, %v1627_v43 }
 0x1d1   : > { %1630 = vmatprep.subr.bf16.mxu0 %v1889_v51  ;;  %v1177_v23 = vmul.f32 0.5, %v1161_v34 }
 0x1d3   : > { %v1631_v55 = vpack.c.bf16 %v1177_v23, %v1176_v52 }
 0x1d5   : > { %1633 = vmatpush3.bf16.msk.msra.mxu0 %vm2648_vm2, %v1631_v55 }
 0x1d8   : > { %1600 = vmatmul.mubr.f32.vlgmr.msra.gmra.mrb[16].mxu0 %v1211_v17 }
 0x2ab   : > { %v1278_v28 = vpop.f32.mrb[16].mxu0 }
 0x2ac   : > { %v1282_v13 = vadd.f32 %v1278_v28, %v1210_v38  ;;  %v1601_v42 = vpop.f32.mrb[17].mxu0 }
 0x2ae   : > { %1283 = vst [vmem:[%s2182_s6] sm:$0x7] %v1282_v13 }
 0x2b5   : > { %v1287_v51 = vld [vmem:[%s2182_s6] sm:$0x7] }
 0x2b6   : > { %v1288_v20 = vmin.f32 %v1287_v51, 1.0 }
 0x2b8   : > { %1289 = vst [vmem:[%s2182_s6] sm:$0x7] %v1288_v20 }
 0x2b9   : > { %1819 = shalt.err (!%p1816_p5)
}
 0x2ba   : > { %s1820_s28 = scalar_lea.hbm %s2674_s19, 64  ;;  %s1824_s30 = scalar_lea.hbm %s2727_s3, 128 }
 0x2bb   : > { %p1821_p6 = scmp.ne.s32.totalorder %s2674_s19, %s1820_s28  ;;  %p1825_p10 = scmp.lt.u32.totalorder %s2674_s19, %s2727_s3 }
 0x2bc   : > { %p1826_p11 = scmp.lt.u32.totalorder %s1824_s30, %s1820_s28  ;;  %p1828_p13 = scmp.lt.u32.totalorder %s1820_s28, %s2674_s19 }
 0x2bd   : > { %p1822_p7 = pnand %p1821_p6, %p1954_p4 }
 0x2be   : > { %p1827_p12 = por %p1826_p11, %p1825_p10 }
 0x2bf   : > { %p1823_p9 = pneg %p1822_p7 }
 0x2c0   : > { %p1829_p0 = por %p1828_p13, %p1827_p12 }
 0x2c2   : > { %p1830_p1 = pnand %p1829_p0, %p1823_p9 }
 0x2c4   : > { %1833 = shalt.err (!%p1830_p1)
}
 0x2c5   : > { %1634 = dma.vmem_to_hbm [thread:$0]  (%p1954_p4), %s2676_s10, 64, %s2674_s19, %s1291_s21  }
 0x2c6 PF: > { %p1640_p2 = scmp.ge.s32.totalorder %s1884_s17, 2  ;;  %s1316_s7 = sand.u32 1, %s1864_s12  }
 0x2c7   : > { %s1317_s8 = scalar_lea.sflag [#allocation3], %s1316_s7 }
 0x2c8   : > { %p1637_p3 = pnand %p1640_p2, %p1961_p8 }
 0x2ca   : > { %1859 = dma.done.wait (!%p1637_p3), %s1317_s8, 64  }
 0x2cb   : > { %1861 = vsyncadd (!%p1637_p3), %s1317_s8, 4294967232  ;;  %s16_s17 = sadd.s32 1, %s1884_s17   ;;  %s2756_s12 = smov %s1868_s13 }
 0x2cc   : > { %p13_p5 = scmp.ge.s32.totalorder %s16_s17, 4   ;;  %s2757_s13 = smov %s1872_s14 }
 0x2cd   : > { %s2758_s14 = smov %s1967_s25  ;;  %s2759_s15 = smov %s1880_s16 }
 0x2ce   : > { %s2760_s16 = smov %s2762_s20  ;;  %15 = sbr.rel (!%p13_p5) target bundleno = 4 (0x4), region = 81 }
 0x2d5   :  { %1322 = vsyncpa [#allocation3], 1 }
 0x2d6   :  { %1324 = vsyncpa [#allocation3 + $0x1], 1 }

</bundles_post_ra>
